<compile_context>
chip_gen: v7x
topology: tpu7x:2x2x1
jax: 0.10.0
libtpu: 0.0.40
codegen_flags: <defaults>
</compile_context>

<pallas_src>
from functools import partial

import jax
import jax.numpy as jnp
from jax.experimental import pallas as pl
from jax.experimental.pallas import tpu as pltpu

_LANE = 128
_SUBLANE = 8

_VMEM_LIMIT_CACHE = None


def _vmem_limit_bytes():
    """VMEM limit per generation: ~75% of physical, capped at 100 MiB."""
    global _VMEM_LIMIT_CACHE
    if _VMEM_LIMIT_CACHE is None:
        cap = 64 * 1024 * 1024          # v7x-safe fallback if the query fails
        try:
            cap = int(pltpu.get_tpu_info().vmem_capacity_bytes)
        except Exception:
            pass
        _VMEM_LIMIT_CACHE = int(min((cap * 3) // 4, 100 * 1024 * 1024))
    return _VMEM_LIMIT_CACHE


def _pick_row_tile(n_rows, d, itemsize, budget_bytes):
    """Rows per block: double-buffered (in + out) block bytes <= budget."""
    per_row = 4 * d * itemsize                       # 2 bufs x (in + out), same dtype
    tile = (budget_bytes // per_row) // _SUBLANE * _SUBLANE
    row_cap = max(_SUBLANE, (n_rows // _SUBLANE) * _SUBLANE)
    return int(max(_SUBLANE, min(tile, row_cap)))


def _pick_feature_tile(d, n_rows, n_graphs, itemsize, budget_bytes):
    """Feature columns per graphnorm block (full N column is resident)."""
    if d % _LANE != 0:
        return d                                     # one full-D block; Mosaic pads lanes internally
    resident = 4 * n_rows * n_graphs + 64 * 1024     # bf16 scatter + gather + params slack
    per_col = 4 * n_rows * itemsize                  # 2 bufs x (in + out), per feature column
    avail = max(budget_bytes - resident, 0)
    max_cols = (avail // per_col) // _LANE * _LANE
    if max_cols < _LANE:
        # TODO(synk): for very large N switch to a row-slab PrefetchScalarGridSpec
        # (per-graph contiguous row slices) instead of keeping full N columns in
        # VMEM; for now take the minimum legal tile and let vmem_limit absorb it.
        max_cols = _LANE
    cap = d // 2 if (d % 256 == 0) else d            # prefer >=2 grid steps (pipelining + v7x megacore)
    tile = min(d, cap, max_cols)
    while d % tile != 0:
        tile -= _LANE
    return int(max(tile, _LANE))


def _check_total_nodes(batch_num_nodes, n_nodes):
    try:
        total = int(jnp.sum(batch_num_nodes))
    except Exception:
        return                                       # traced: cannot check at trace time
    if total != n_nodes:
        raise ValueError(
            f"sum(batch_num_nodes)={total} does not match number of rows N={n_nodes}")


# ----------------------------- graphnorm kernel -------------------------------
def _graphnorm_kernel(scatter_ref, gather_ref, invcnt_ref, x_ref, w_ref, b_ref,
                      ms_ref, o_ref, *, eps):
    xv = x_ref[...]                                  # [N, TILE_D] caller dtype
    x = xv.astype(jnp.float32)
    xb = xv.astype(jnp.bfloat16)                     # bf16 MXU operand (f32 accumulation below)

    scatter = scatter_ref[...]                       # [B, N] bf16 one-hot membership (resident)
    gather = gather_ref[...]                         # [N, B] bf16 membership^T (resident)
    inv_cnt = invcnt_ref[...]                        # [B, 1] f32, 0 for empty graphs

    # Segment mean: [B,N] @ [N,D] on the MXU, scaled by 1/count in f32.
    mean = jnp.dot(scatter, xb, preferred_element_type=jnp.float32) * inv_cnt
    # Per-node expansion (repeat_interleave) as a one-hot matmul.
    mean_pn = jnp.dot(gather, mean.astype(jnp.bfloat16),
                      preferred_element_type=jnp.float32)
    sub = x - mean_pn * ms_ref[...]
    var = jnp.dot(scatter, (sub * sub).astype(jnp.bfloat16),
                  preferred_element_type=jnp.float32) * inv_cnt
    inv_std = jax.lax.rsqrt(var + eps)               # rsqrt on [B,D] stats, multiply per node
    inv_std_pn = jnp.dot(gather, inv_std.astype(jnp.bfloat16),
                         preferred_element_type=jnp.float32)
    o_ref[...] = (w_ref[...] * sub * inv_std_pn + b_ref[...]).astype(o_ref.dtype)


def graphnorm_forward(x, batch_num_nodes, weight, bias, mean_scale, eps=1e-6):
    N, D = x.shape
    bn = jnp.asarray(batch_num_nodes, dtype=jnp.int32)
    B = int(bn.shape[0])
    _check_total_nodes(bn, N)

    # Per-node graph id (== torch.arange(B).repeat_interleave(batch_list)).
    seg = jnp.repeat(jnp.arange(B, dtype=jnp.int32), bn, total_repeat_length=N)
    # One-hot membership built once outside the kernel (tiny B*N bf16 arrays,
    # fetched once and VMEM-resident across every feature tile / both cores).
    scatter = (jnp.arange(B, dtype=jnp.int32)[:, None] == seg[None, :]).astype(jnp.bfloat16)  # [B, N]
    gather = (seg[:, None] == jnp.arange(B, dtype=jnp.int32)[None, :]).astype(jnp.bfloat16)   # [N, B]
    cnt = bn.astype(jnp.float32)
    inv_cnt = jnp.where(cnt > 0, 1.0 / jnp.maximum(cnt, 1.0), 0.0).reshape(B, 1)

    w = weight.astype(jnp.float32).reshape(1, D)
    b = bias.astype(jnp.float32).reshape(1, D)
    ms = mean_scale.astype(jnp.float32).reshape(1, D)

    vmem_limit = _vmem_limit_bytes()
    itemsize = int(jnp.dtype(x.dtype).itemsize)
    tile_d = _pick_feature_tile(D, N, B, itemsize, vmem_limit // 2)
    grid = (D // tile_d,)

    out = pl.pallas_call(
        partial(_graphnorm_kernel, eps=eps),
        out_shape=jax.ShapeDtypeStruct((N, D), x.dtype),
        grid=grid,
        in_specs=[
            pl.BlockSpec((B, N), lambda j: (0, 0)),        # scatter (resident)
            pl.BlockSpec((N, B), lambda j: (0, 0)),        # gather (resident)
            pl.BlockSpec((B, 1), lambda j: (0, 0)),        # inv_cnt (resident)
            pl.BlockSpec((N, tile_d), lambda j: (0, j)),   # x feature tile
            pl.BlockSpec((1, tile_d), lambda j: (0, j)),   # weight
            pl.BlockSpec((1, tile_d), lambda j: (0, j)),   # bias
            pl.BlockSpec((1, tile_d), lambda j: (0, j)),   # mean_scale
        ],
        out_specs=pl.BlockSpec((N, tile_d), lambda j: (0, j)),
        compiler_params=pltpu.CompilerParams(
            dimension_semantics=("parallel",),
            vmem_limit_bytes=vmem_limit),
        cost_estimate=pl.CostEstimate(
            flops=8 * B * N * D + 8 * N * D,
            transcendentals=B * D,
            bytes_accessed=2 * N * D * itemsize + 4 * N * B),
    )(scatter, gather, inv_cnt, x, w, b, ms)
    return out


# ----------------------------- layernorm kernel -------------------------------
def _layernorm_kernel(x_ref, w_ref, b_ref, o_ref, *, eps):
    x = x_ref[...].astype(jnp.float32)               # [TILE_N, D]; ragged rows dropped on store
    mean = jnp.mean(x, axis=-1, keepdims=True)
    diff = x - mean
    var = jnp.mean(diff * diff, axis=-1, keepdims=True)   # biased, like PyTorch
    o_ref[...] = (diff * jax.lax.rsqrt(var + eps) * w_ref[...]
                  + b_ref[...]).astype(o_ref.dtype)


def layernorm_forward(x, weight, bias, eps=1e-5):
    N, D = x.shape
    w = weight.astype(jnp.float32).reshape(1, D)
    b = bias.astype(jnp.float32).reshape(1, D)

    vmem_limit = _vmem_limit_bytes()
    itemsize = int(jnp.dtype(x.dtype).itemsize)
    tile_n = _pick_row_tile(N, D, itemsize, vmem_limit // 2)
    grid = (pl.cdiv(N, tile_n),)

    out = pl.pallas_call(
        partial(_layernorm_kernel, eps=eps),
        out_shape=jax.ShapeDtypeStruct((N, D), x.dtype),
        grid=grid,
        in_specs=[
            pl.BlockSpec((tile_n, D), lambda i: (i, 0)),
            pl.BlockSpec((1, D), lambda i: (0, 0)),
            pl.BlockSpec((1, D), lambda i: (0, 0)),
        ],
        out_specs=pl.BlockSpec((tile_n, D), lambda i: (i, 0)),
        compiler_params=pltpu.CompilerParams(
            dimension_semantics=("parallel",),
            vmem_limit_bytes=vmem_limit),
        cost_estimate=pl.CostEstimate(
            flops=8 * N * D, transcendentals=N,
            bytes_accessed=2 * N * D * itemsize + 8 * D),
    )(x, w, b)
    return out


# ----------------------------- batchnorm kernels ------------------------------
def _bn_stats_kernel(x_ref, sum_ref, sumsq_ref, *, n_rows, tile_n, needs_mask):
    @pl.when(pl.program_id(0) == 0)
    def _():
        sum_ref[...] = jnp.zeros_like(sum_ref)
        sumsq_ref[...] = jnp.zeros_like(sumsq_ref)
    x = x_ref[...].astype(jnp.float32)
    if needs_mask:
        # Mask ragged rows of the last block (their contents are undefined).
        row = jax.lax.broadcasted_iota(jnp.int32, x.shape, 0) + pl.program_id(0) * tile_n
        x = jnp.where(row < n_rows, x, 0.0)
    sum_ref[...] += jnp.sum(x, axis=0, keepdims=True)
    sumsq_ref[...] += jnp.sum(x * x, axis=0, keepdims=True)
    # TODO(synk): on v7x, split this pass across the two TensorCores (size-2
    # parallel axis producing per-core partials) to use both cores' HBM BW.


def _bn_norm_kernel(x_ref, sum_ref, sumsq_ref, w_ref, b_ref, o_ref, *, n_rows, eps):
    x = x_ref[...].astype(jnp.float32)
    inv_n = 1.0 / n_rows
    mean = sum_ref[...] * inv_n
    # TODO(synk): E[x^2] - mean^2 can cancel when |mean| >> std; a centered second
    # pass / Kahan accumulation would be more robust for non-normalized inputs.
    var = jnp.maximum(sumsq_ref[...] * inv_n - mean * mean, 0.0)   # biased batch var
    o_ref[...] = ((x - mean) * jax.lax.rsqrt(var + eps) * w_ref[...]
                  + b_ref[...]).astype(o_ref.dtype)


def batchnorm_forward(x, weight, bias, eps=1e-5):
    # Training-mode forward using batch statistics (running stats not modeled).
    N, D = x.shape
    w = weight.astype(jnp.float32).reshape(1, D)
    b = bias.astype(jnp.float32).reshape(1, D)

    vmem_limit = _vmem_limit_bytes()
    itemsize = int(jnp.dtype(x.dtype).itemsize)
    tile_n = _pick_row_tile(N, D, itemsize, vmem_limit // 2)
    grid = (pl.cdiv(N, tile_n),)
    needs_mask = (N % tile_n) != 0

    # Pass 1: per-feature sum / sum-of-squares, resident (1, D) accumulators.
    sums, sumsqs = pl.pallas_call(
        partial(_bn_stats_kernel, n_rows=N, tile_n=tile_n, needs_mask=needs_mask),
        out_shape=(jax.ShapeDtypeStruct((1, D), jnp.float32),
                   jax.ShapeDtypeStruct((1, D), jnp.float32)),
        grid=grid,
        in_specs=[pl.BlockSpec((tile_n, D), lambda i: (i, 0))],
        out_specs=(pl.BlockSpec((1, D), lambda i: (0, 0)),
                   pl.BlockSpec((1, D), lambda i: (0, 0))),
        compiler_params=pltpu.CompilerParams(
            dimension_semantics=("arbitrary",),
            vmem_limit_bytes=vmem_limit),
        cost_estimate=pl.CostEstimate(
            flops=3 * N * D, transcendentals=0,
            bytes_accessed=N * D * itemsize + 8 * D),
    )(x)

    # Pass 2: normalize, row-tiled and parallel.
    # TODO(synk): could fuse both passes into one pallas_call with a (2, n_tiles)
    # grid (stats in VMEM scratch) to drop a launch and the stats round trip.
    out = pl.pallas_call(
        partial(_bn_norm_kernel, n_rows=N, eps=eps),
        out_shape=jax.ShapeDtypeStruct((N, D), x.dtype),
        grid=grid,
        in_specs=[
            pl.BlockSpec((tile_n, D), lambda i: (i, 0)),
            pl.BlockSpec((1, D), lambda i: (0, 0)),
            pl.BlockSpec((1, D), lambda i: (0, 0)),
            pl.BlockSpec((1, D), lambda i: (0, 0)),
            pl.BlockSpec((1, D), lambda i: (0, 0)),
        ],
        out_specs=pl.BlockSpec((tile_n, D), lambda i: (i, 0)),
        compiler_params=pltpu.CompilerParams(
            dimension_semantics=("parallel",),
            vmem_limit_bytes=vmem_limit),
        cost_estimate=pl.CostEstimate(
            flops=4 * N * D, transcendentals=D,
            bytes_accessed=2 * N * D * itemsize + 16 * D),
    )(x, sums, sumsqs, w, b)
    return out


# ----------------------------- module wrapper ---------------------------------
class NormLayer:
    def __init__(self, hidden_dim, norm_type):
        if norm_type not in ("batchnorm", "layernorm", "graphnorm"):
            raise NotImplementedError
        self.norm_type = norm_type
        self.hidden_dim = hidden_dim
        # PyTorch default init (weight=1, bias=0, mean_scale=1)
        self.weight = jnp.ones((hidden_dim,), jnp.float32)
        self.bias = jnp.zeros((hidden_dim,), jnp.float32)
        if norm_type == "graphnorm":
            self.mean_scale = jnp.ones((hidden_dim,), jnp.float32)

    def __call__(self, batch_num_nodes, x):
        if self.norm_type == "batchnorm":
            return batchnorm_forward(x, self.weight, self.bias)
        if self.norm_type == "layernorm":
            return layernorm_forward(x, self.weight, self.bias)
        return graphnorm_forward(x, batch_num_nodes, self.weight, self.bias,
                                 self.mean_scale)


# pure-JAX reference for graphnorm (sanity check only)
def _graphnorm_ref(x, batch_num_nodes, weight, bias, mean_scale, eps=1e-6):
    N, D = x.shape
    B = int(batch_num_nodes.shape[0])
    seg = jnp.repeat(jnp.arange(B), batch_num_nodes, total_repeat_length=N)
    cnt = batch_num_nodes.astype(jnp.float32)[:, None]
    mean = jax.ops.segment_sum(x, seg, num_segments=B) / cnt
    sub = x - mean[seg] * mean_scale
    var = jax.ops.segment_sum(sub * sub, seg, num_segments=B) / cnt
    std = jnp.sqrt(var + eps)
    return weight * sub / std[seg] + bias


if __name__ == "__main__":
    key = jax.random.PRNGKey(0)
    N, D = 12, 32
    batch_num_nodes = jnp.array([5, 4, 3], dtype=jnp.int32)   # 3 graphs, 12 nodes total
    k1, k2, k3, k4 = jax.random.split(key, 4)
    x = jax.random.normal(k1, (N, D), dtype=jnp.float32)
    # random affine params so the weight / bias / mean_scale paths are validated
    w = 1.0 + 0.1 * jax.random.normal(k2, (D,), dtype=jnp.float32)
    b = 0.1 * jax.random.normal(k3, (D,), dtype=jnp.float32)
    ms = 1.0 + 0.1 * jax.random.normal(k4, (D,), dtype=jnp.float32)

    # graphnorm (the custom path of the module) — the Pallas hot path
    gn = NormLayer(D, "graphnorm")
    gn.weight, gn.bias, gn.mean_scale = w, b, ms
    out_gn = jax.block_until_ready(gn(batch_num_nodes, x))
    ref_gn = _graphnorm_ref(x, batch_num_nodes, w, b, ms)
    assert out_gn.shape == (N, D) and out_gn.dtype == x.dtype
    assert jnp.allclose(out_gn, ref_gn, atol=2e-2, rtol=2e-2)

    # graphnorm with bf16 I/O (dtype-preserving path, no host casts)
    out_gn_bf16 = jax.block_until_ready(gn(batch_num_nodes, x.astype(jnp.bfloat16)))
    assert out_gn_bf16.dtype == jnp.bfloat16
    assert jnp.allclose(out_gn_bf16.astype(jnp.float32), ref_gn, atol=1e-1, rtol=1e-1)

    # layernorm branch
    ln = NormLayer(D, "layernorm")
    ln.weight, ln.bias = w, b
    out_ln = jax.block_until_ready(ln(batch_num_nodes, x))
    mu = jnp.mean(x, axis=-1, keepdims=True)
    va = jnp.mean((x - mu) ** 2, axis=-1, keepdims=True)
    ref_ln = (x - mu) * jax.lax.rsqrt(va + 1e-5) * w + b
    assert out_ln.dtype == x.dtype
    assert jnp.allclose(out_ln, ref_ln, atol=1e-3, rtol=1e-3)

    # batchnorm branch (training-mode batch statistics)
    bn = NormLayer(D, "batchnorm")
    bn.weight, bn.bias = w, b
    out_bn = jax.block_until_ready(bn(batch_num_nodes, x))
    mu = jnp.mean(x, axis=0, keepdims=True)
    va = jnp.mean((x - mu) ** 2, axis=0, keepdims=True)
    ref_bn = (x - mu) * jax.lax.rsqrt(va + 1e-5) * w + b
    assert out_bn.dtype == x.dtype
    assert jnp.allclose(out_bn, ref_bn, atol=1e-3, rtol=1e-3)

    print("KERNEL_OK")
</pallas_src>

<mosaic_0001>
module attributes {stable_mosaic.version = 11 : i64} {
  func.func @_graphnorm_kernel(%arg0: i32, %arg1: memref<3x12xbf16, #tpu.memory_space<vmem>>, %arg2: memref<12x3xbf16, #tpu.memory_space<vmem>>, %arg3: memref<3x1xf32, #tpu.memory_space<vmem>>, %arg4: memref<12x32xf32, #tpu.memory_space<vmem>>, %arg5: memref<1x32xf32, #tpu.memory_space<vmem>>, %arg6: memref<1x32xf32, #tpu.memory_space<vmem>>, %arg7: memref<1x32xf32, #tpu.memory_space<vmem>>, %arg8: memref<12x32xf32, #tpu.memory_space<vmem>>) attributes {dimension_semantics = [#tpu.dimension_semantics<parallel>], iteration_bounds = array<i64: 1>, scalar_prefetch = 0 : i64, scratch_operands = 0 : i64, tpu.core_type = #tpu.core_type<tc>, window_params = [{pipeline_mode = #tpu.pipeline_mode<synchronous>, transform_indices = @transform_0, window_bounds = array<i64: 3, 12>}, {pipeline_mode = #tpu.pipeline_mode<synchronous>, transform_indices = @transform_1, window_bounds = array<i64: 12, 3>}, {pipeline_mode = #tpu.pipeline_mode<synchronous>, transform_indices = @transform_2, window_bounds = array<i64: 3, 1>}, {transform_indices = @transform_3, window_bounds = array<i64: 12, 32>}, {transform_indices = @transform_4, window_bounds = array<i64: 1, 32>}, {transform_indices = @transform_5, window_bounds = array<i64: 1, 32>}, {transform_indices = @transform_6, window_bounds = array<i64: 1, 32>}, {transform_indices = @transform_7, window_bounds = array<i64: 12, 32>}]} {
    %c0 = arith.constant 0 : index
    %c0_0 = arith.constant 0 : index
    %0 = vector.load %arg4[%c0, %c0_0] : memref<12x32xf32, #tpu.memory_space<vmem>>, vector<12x32xf32>
    %1 = arith.truncf %0 : vector<12x32xf32> to vector<12x32xbf16>
    %c0_1 = arith.constant 0 : index
    %c0_2 = arith.constant 0 : index
    %2 = vector.load %arg1[%c0_1, %c0_2] : memref<3x12xbf16, #tpu.memory_space<vmem>>, vector<3x12xbf16>
    %c0_3 = arith.constant 0 : index
    %c0_4 = arith.constant 0 : index
    %3 = vector.load %arg2[%c0_3, %c0_4] : memref<12x3xbf16, #tpu.memory_space<vmem>>, vector<12x3xbf16>
    %c0_5 = arith.constant 0 : index
    %c0_6 = arith.constant 0 : index
    %4 = vector.load %arg3[%c0_5, %c0_6] : memref<3x1xf32, #tpu.memory_space<vmem>>, vector<3x1xf32>
    %cst = arith.constant dense<0.000000e+00> : vector<3x32xf32>
    %5 = tpu.matmul %2, %1, %cst {dimension_numbers = #tpu.dot_dimension_numbers<[1], [0], [0], [1], [0, 0, 1, 1], [], []>} : vector<3x12xbf16>, vector<12x32xbf16>, vector<3x32xf32> -> vector<3x32xf32>
    %6 = vector.broadcast %4 : vector<3x1xf32> to vector<3x32xf32>
    %7 = arith.mulf %5, %6 : vector<3x32xf32>
    %8 = arith.truncf %7 : vector<3x32xf32> to vector<3x32xbf16>
    %cst_7 = arith.constant dense<0.000000e+00> : vector<12x32xf32>
    %9 = tpu.matmul %3, %8, %cst_7 {dimension_numbers = #tpu.dot_dimension_numbers<[1], [0], [0], [1], [0, 0, 1, 1], [], []>} : vector<12x3xbf16>, vector<3x32xbf16>, vector<12x32xf32> -> vector<12x32xf32>
    %c0_8 = arith.constant 0 : index
    %c0_9 = arith.constant 0 : index
    %10 = vector.load %arg7[%c0_8, %c0_9] : memref<1x32xf32, #tpu.memory_space<vmem>>, vector<1x32xf32>
    %11 = vector.broadcast %10 : vector<1x32xf32> to vector<12x32xf32>
    %12 = arith.mulf %9, %11 : vector<12x32xf32>
    %13 = arith.subf %0, %12 : vector<12x32xf32>
    %14 = arith.mulf %13, %13 : vector<12x32xf32>
    %15 = arith.truncf %14 : vector<12x32xf32> to vector<12x32xbf16>
    %cst_10 = arith.constant dense<0.000000e+00> : vector<3x32xf32>
    %16 = tpu.matmul %2, %15, %cst_10 {dimension_numbers = #tpu.dot_dimension_numbers<[1], [0], [0], [1], [0, 0, 1, 1], [], []>} : vector<3x12xbf16>, vector<12x32xbf16>, vector<3x32xf32> -> vector<3x32xf32>
    %17 = vector.broadcast %4 : vector<3x1xf32> to vector<3x32xf32>
    %18 = arith.mulf %16, %17 : vector<3x32xf32>
    %cst_11 = arith.constant 9.99999997E-7 : f32
    %19 = vector.broadcast %cst_11 : f32 to vector<3x32xf32>
    %20 = arith.addf %18, %19 : vector<3x32xf32>
    %21 = math.rsqrt %20 : vector<3x32xf32>
    %22 = arith.truncf %21 : vector<3x32xf32> to vector<3x32xbf16>
    %cst_12 = arith.constant dense<0.000000e+00> : vector<12x32xf32>
    %23 = tpu.matmul %3, %22, %cst_12 {dimension_numbers = #tpu.dot_dimension_numbers<[1], [0], [0], [1], [0, 0, 1, 1], [], []>} : vector<12x3xbf16>, vector<3x32xbf16>, vector<12x32xf32> -> vector<12x32xf32>
    %c0_13 = arith.constant 0 : index
    %c0_14 = arith.constant 0 : index
    %24 = vector.load %arg5[%c0_13, %c0_14] : memref<1x32xf32, #tpu.memory_space<vmem>>, vector<1x32xf32>
    %25 = vector.broadcast %24 : vector<1x32xf32> to vector<12x32xf32>
    %26 = arith.mulf %25, %13 : vector<12x32xf32>
    %27 = arith.mulf %26, %23 : vector<12x32xf32>
    %c0_15 = arith.constant 0 : index
    %c0_16 = arith.constant 0 : index
    %28 = vector.load %arg6[%c0_15, %c0_16] : memref<1x32xf32, #tpu.memory_space<vmem>>, vector<1x32xf32>
    %29 = vector.broadcast %28 : vector<1x32xf32> to vector<12x32xf32>
    %30 = arith.addf %27, %29 : vector<12x32xf32>
    %c0_17 = arith.constant 0 : index
    %c0_18 = arith.constant 0 : index
    %31 = vector.load %arg8[%c0_17, %c0_18] : memref<12x32xf32, #tpu.memory_space<vmem>>, vector<12x32xf32>
    tpu.vector_store %arg8[%c0_17, %c0_18], %30 {strides = array<i32>} : memref<12x32xf32, #tpu.memory_space<vmem>>, vector<12x32xf32>,
    return
  }
  func.func @transform_0(%arg0: i32) -> (i32, i32) {
    %c0_i32 = arith.constant 0 : i32
    %c0_i32_0 = arith.constant 0 : i32
    %c0_i32_1 = arith.constant 0 : i32
    return %c0_i32, %c0_i32_0 : i32, i32
  }
  func.func @transform_1(%arg0: i32) -> (i32, i32) {
    %c0_i32 = arith.constant 0 : i32
    %c0_i32_0 = arith.constant 0 : i32
    %c0_i32_1 = arith.constant 0 : i32
    return %c0_i32, %c0_i32_0 : i32, i32
  }
  func.func @transform_2(%arg0: i32) -> (i32, i32) {
    %c0_i32 = arith.constant 0 : i32
    %c0_i32_0 = arith.constant 0 : i32
    %c0_i32_1 = arith.constant 0 : i32
    return %c0_i32, %c0_i32_0 : i32, i32
  }
  func.func @transform_3(%arg0: i32) -> (i32, i32) {
    %c0_i32 = arith.constant 0 : i32
    %c0_i32_0 = arith.constant 0 : i32
    return %c0_i32, %arg0 : i32, i32
  }
  func.func @transform_4(%arg0: i32) -> (i32, i32) {
    %c0_i32 = arith.constant 0 : i32
    %c0_i32_0 = arith.constant 0 : i32
    return %c0_i32, %arg0 : i32, i32
  }
  func.func @transform_5(%arg0: i32) -> (i32, i32) {
    %c0_i32 = arith.constant 0 : i32
    %c0_i32_0 = arith.constant 0 : i32
    return %c0_i32, %arg0 : i32, i32
  }
  func.func @transform_6(%arg0: i32) -> (i32, i32) {
    %c0_i32 = arith.constant 0 : i32
    %c0_i32_0 = arith.constant 0 : i32
    return %c0_i32, %arg0 : i32, i32
  }
  func.func @transform_7(%arg0: i32) -> (i32, i32) {
    %c0_i32 = arith.constant 0 : i32
    %c0_i32_0 = arith.constant 0 : i32
    return %c0_i32, %arg0 : i32, i32
  }
}

</mosaic_0001>

<bundles_post_ra>
// kernel: tpu_custom_call.1
= control target key start
LH: loop header
LB: loop body
LE: loop exit
PB: predicated region body
PF: predicated region fallthrough
CT: control target
= control target key end

     0   :  { %vm39_vm0 = vcmask 1045504   ;;  %v367_v2 = vmov 0.0   ;;  %vm368_vm1 = vmmov 0   ;;  %v369_v5 = vmov 0   ;;  %s460_s0 = inlined_call_operand.vmem [shape: bf16[3,12], index: 0, kind: input, shape index: {}]   ;;  %s461_s1 = inlined_call_operand.vmem [shape: bf16[12,3], index: 1, kind: input, shape index: {}]   ;;  %s462_s2 = inlined_call_operand.vmem [shape: f32[3,1], index: 2, kind: input, shape index: {}]   ;;  %s463_s3 = inlined_call_operand.vmem [shape: f32[12,32], index: 3, kind: input, shape index: {}]   ;;  %s464_s4 = inlined_call_operand.vmem [shape: f32[1,32], index: 4, kind: input, shape index: {}]   ;;  %s465_s5 = inlined_call_operand.vmem [shape: f32[1,32], index: 5, kind: input, shape index: {}]   ;;  %s466_s6 = inlined_call_operand.vmem [shape: f32[1,32], index: 6, kind: input, shape index: {}]   ;;  %s467_s7 = inlined_call_operand.hbm [shape: f32[12,32], index: 7, kind: output, shape index: {}]  }
   0x1   :  { %v28_v0 = vld [vmem:[%s463_s3] sm:$0xff]  ;;  %v29_v1 = vld [vmem:[%s463_s3 + $0x8] sm:$0xf]  ;;  %308 = vmatprep.subr.bf16.mxu0 %v367_v2  ;;  %310 = vmatprep.mubr.msk.bf16.mxu0 %vm368_vm1, %v367_v2 }
   0x2   :  { %v30_v3 = vpack.c.bf16 %v29_v1, %v28_v0  ;;  %v34_v4 = vld [vmem:[%s462_s2] sm:$0x7]  ;;  %339 = vset.pattern.permute.xlu0 %v369_v5  ;;  %314 = vmatprep.subr.bf16.mxu1 %v367_v2 }
   0x3   :  { %12 = vsyncpa [#allocation3], 0  ;;  %85 = vperm.xlu0 %339, %v34_v4   ;;  %316 = vmatprep.mubr.msk.bf16.mxu1 %vm368_vm1, %v367_v2  ;;  %v31_v7 = vld [vmem:[%s460_s0] sm:$0x3]  ;;  %vm35_vm2 = vcmask 97280   ;;  %vm99_vm3 = vcmask 1040384  }
   0x4   :  { %v41_v6 = vsel %vm39_vm0, %v30_v3, 0  ;;  %vm100_vm4 = vcmask 1041408   ;;  %v370_v9 = vmov 65535   ;;  %v340_v19 = vld [vmem:[%s461_s1] sm:$0x3f]   ;;  %vm95_vm5 = vcmask 23552  }
   0x5   :  { %309 = vmatpush3.bf16.msra.mxu0 %v41_v6  ;;  %v101_v10 = vsel %vm99_vm3, 4294967295, %v370_v9  ;;  %v295_v20 = vld [vmem:[%s466_s6] ss:$0 sm:$0xff]  ;;  %s371_s12 = smov [#allocation2]   ;;  %vm272_vm6 = vcmask 261120   ;;  %vm274_vm7 = vcmask 257024  }
   0x6   :  { %320 = vmatprep.subr.bf16.mxu0 %v367_v2  ;;  %v102_v15 = vsel %vm100_vm4, %v101_v10, 0  ;;  %v298_v42 = vld [vmem:[%s464_s4] ss:$0 sm:$0xff]  ;;  %s281_s13 = sshll.u32 %s371_s12, 4  ;;  %s282_s13 = int_to_ptr.vmem [resolvable:$true] %s281_s13 }
   0x7   :  { %v299_v45 = vld [vmem:[%s465_s5] ss:$0 sm:$0xff]  ;;  %s343_s4 = scalar_lea.vmem %s282_s13, 256  ;;  %p348_p1 = scmp.lt.s32.totalorder %s282_s13, %s282_s13 }
   0x8   :  { %311 = vmatmul.mubr.msk.bf16.vlgmr.msra.gmra.mrb[0].mxu0 %vm35_vm2, %v31_v7  ;;  %p344_p0 = scmp.ne.s32.totalorder %s282_s13, %s343_s4  ;;  %p349_p2 = scmp.lt.s32.totalorder %s343_s4, %s343_s4 }
   0x9   :  { %322 = vmatprep.mubr.msk.bf16.mxu0 %vm368_vm1, %v367_v2 }
   0xa   :  { %p350_p3 = por %p349_p2, %p348_p1 }
   0xc   :  { %p351_p4 = pnand %p350_p3, %p344_p0 }
  0x82   :  { %v86_v8 = vpop.permute.xlu0 %85 }
  0xdb   :  { %v77_v11 = vpop.f32.mrb[0].mxu0 }
  0xdc   :  { %v88_v12 = vmul.f32 %v86_v8, %v77_v11  ;;  %v312_v13 = vpop.f32.mrb[1].mxu0 }
  0xdd   :  { %v80_v14 = vpop.f32.mrb[2].mxu0 }
  0xde   :  { %v89_v16 = vpack.c.bf16 %v88_v12, %v88_v12  ;;  %v313_v17 = vpop.f32.mrb[3].mxu0 }
  0xe0   :  { %v104_v18 = vand.u32 %v102_v15, %v89_v16 }
  0xe2   :  { %315 = vmatpush3.bf16.msra.mxu1 %v104_v18 }
  0xe3   :  { %326 = vmatprep.subr.bf16.mxu1 %v367_v2 }
  0xe5   :  { %317 = vmatmul.mubr.msk.bf16.vlgmr.msra.gmra.mrb[0].mxu1 %vm95_vm5, %v340_v19 }
  0xe6   :  { %328 = vmatprep.mubr.msk.bf16.mxu1 %vm368_vm1, %v367_v2 }
 0x1b8   :  { %v140_v21 = vpop.f32.mrb[0].mxu1 }
 0x1b9   :  { %v154_v22 = vmul.f32 %v295_v20, %v140_v21  ;;  %v318_v23 = vpop.f32.mrb[1].mxu1 }
 0x1ba   :  { %v143_v24 = vpop.f32.mrb[2].mxu1 }
 0x1bb   :  { %v156_v25 = vsub.f32 %v28_v0, %v154_v22  ;;  %v155_v26 = vmul.f32 %v295_v20, %v143_v24  ;;  %v319_v27 = vpop.f32.mrb[3].mxu1 }
 0x1bd   :  { %v157_v28 = vsub.f32 %v29_v1, %v155_v26  ;;  %v158_v29 = vmul.f32 %v156_v25, %v156_v25  ;;  %v259_v43 = vmul.f32 %v298_v42, %v156_v25 }
 0x1bf   :  { %v159_v30 = vmul.f32 %v157_v28, %v157_v28  ;;  %v260_v48 = vmul.f32 %v298_v42, %v157_v28 }
 0x1c1   :  { %v160_v31 = vpack.c.bf16 %v159_v30, %v158_v29 }
 0x1c3   :  { %v162_v32 = vsel %vm39_vm0, %v160_v31, 0 }
 0x1c4   :  { %321 = vmatpush3.bf16.msra.mxu0 %v162_v32 }
 0x1c7   :  { %323 = vmatmul.mubr.msk.bf16.vlgmr.msra.gmra.mrb[4].mxu0 %vm35_vm2, %v31_v7 }
 0x29a   :  { %v198_v33 = vpop.f32.mrb[4].mxu0 }
 0x29b   :  { %v204_v34 = vmul.f32 %v198_v33, %v86_v8  ;;  %v324_v35 = vpop.f32.mrb[5].mxu0 }
 0x29c   :  { %v201_v36 = vpop.f32.mrb[6].mxu0 }
 0x29d   :  { %v205_v37 = vadd.f32 1e-06, %v204_v34  ;;  %v325_v38 = vpop.f32.mrb[7].mxu0 }
 0x29f   :  { %341 = vrsqrt.f32 %v205_v37 }
 0x2a9   :  { %v342_v39 = vpop.eup %341 }
 0x2aa   :  { %v207_v40 = vpack.c.bf16 %v342_v39, %v342_v39 }
 0x2ac   :  { %v209_v41 = vand.u32 %v207_v40, %v102_v15 }
 0x2ae   :  { %327 = vmatpush3.bf16.msra.mxu1 %v209_v41 }
 0x2b1   :  { %329 = vmatmul.mubr.msk.bf16.vlgmr.msra.gmra.mrb[4].mxu1 %vm95_vm5, %v340_v19 }
 0x384   :  { %v245_v44 = vpop.f32.mrb[4].mxu1 }
 0x385   :  { %v261_v46 = vmul.f32 %v259_v43, %v245_v44  ;;  %v330_v47 = vpop.f32.mrb[5].mxu1 }
 0x386   :  { %v248_v49 = vpop.f32.mrb[6].mxu1 }
 0x387   :  { %v270_v50 = vadd.f32 %v299_v45, %v261_v46  ;;  %v262_v51 = vmul.f32 %v260_v48, %v248_v49  ;;  %v331_v52 = vpop.f32.mrb[7].mxu1 }
 0x389   :  { %273 = vst.msk [vmem:[#allocation2] sm:$0xff] %vm272_vm6, %v270_v50  ;;  %v271_v53 = vadd.f32 %v299_v45, %v262_v51 }
 0x38b   :  { %275 = vst.msk [vmem:[#allocation2 + $0x8] sm:$0xf] %vm274_vm7, %v271_v53 }
 0x38c   :  { %354 = shalt.err (!%p351_p4)
}
 0x38d   :  { %s355_s15 = scalar_lea.hbm %s467_s7, 256 }
 0x38e   :  { %p356_p5 = scmp.ne.s32.totalorder %s467_s7, %s355_s15  ;;  %p359_p6 = scmp.lt.u32.totalorder %s355_s15, %s467_s7 }
 0x390   :  { %p361_p7 = pnand %p359_p6, %p356_p5 }
 0x392   :  { %364 = shalt.err (!%p361_p7)
}
 0x393   :  { %s372_s20 = smov 128   ;;  %s373_s21 = smov 8  }
 0x394   :  { %287 = dma.vmem_to_hbm [thread:$0]  %s282_s13, 256, %s467_s7, [#allocation3], %s372_s20, %s372_s20, %s373_s21  }
 0x395   :  { %365 = dma.done.wait [#allocation3], 256  }
 0x396   :  { %366 = vsyncadd [#allocation3], 4294967040 }
 0x397   :  { %291 = vsyncpa [#allocation3], 1 }

</bundles_post_ra>
